<compile_context>
chip_gen: v7x
topology: tpu7x:2x2x1
jax: 0.10.0
libtpu: 0.0.40
codegen_flags: <defaults>
</compile_context>

<pallas_src>
import functools

import jax
import jax.numpy as jnp
from jax.experimental import pallas as pl
from jax.experimental.pallas import tpu as pltpu

_NEG = -1e30  # pad value for out-of-vocab lanes; ignored by max / logsumexp


def _round_up(x, m):
    return (x + m - 1) // m * m


def _bigram_kernel(idx_ref, tgt_ref, table_ref, logits_ref, loss_ref,
                   *, n_valid, has_pad):
    tm = idx_ref.shape[0]
    v_pad = table_ref.shape[1]

    idx = idx_ref[...]                                           # (tm, 1) int32
    col = jax.lax.broadcasted_iota(jnp.int32, (tm, v_pad), 1)    # (tm, v_pad)

    # Embedding lookup as one-hot @ table on the MXU (exact row selection).
    onehot = (col == idx).astype(jnp.float32)
    logits = jnp.dot(onehot, table_ref[...],
                     preferred_element_type=jnp.float32)         # (tm, v_pad)
    logits_ref[...] = logits                                     # lane-dense store

    # Row-wise stable logsumexp; padded lanes hold -1e30 -> exp(.) == 0.
    m = jnp.max(logits, axis=-1, keepdims=True)
    lse = m + jnp.log(jnp.sum(jnp.exp(logits - m), axis=-1, keepdims=True))

    # logits[n, tgt[n]] via masked select (drops the second (tm, V) one-hot temp).
    tgt = tgt_ref[...]                                           # (tm, 1) int32
    tgt_logit = jnp.sum(jnp.where(col == tgt, logits, 0.0),
                        axis=-1, keepdims=True)

    per_row = lse - tgt_logit                                    # (tm, 1)
    if has_pad:
        row = (pl.program_id(0) * tm
               + jax.lax.broadcasted_iota(jnp.int32, (tm, 1), 0))
        per_row = jnp.where(row < n_valid, per_row, 0.0)

    # Per-tile partial sum broadcast into a dense (8,128) block (unmasked store);
    # the wrapper reduces across tiles, keeping this grid axis "parallel".
    loss_ref[...] = jnp.full(loss_ref.shape, jnp.sum(per_row), dtype=jnp.float32)


def bigram_forward(idx, targets, table, *, block_rows=None):
    """Pallas forward of BigramLanguageModel.

    idx:     (B, T) int token ids
    targets: (B, T) int token ids, or None
    table:   (V, V) float32 embedding weight (nn.Embedding)
    returns  (logits (B, T, V) float32, loss scalar float32 or None)
    """
    B, T = idx.shape
    V = table.shape[0]
    N = B * T

    v_pad = _round_up(V, 128)
    if block_rows is None:
        # Largest convenient row tile; VMEM use per tile stays tiny (<~1 MiB) even so.
        block_rows = min(512, _round_up(N, 8))
    assert block_rows % 8 == 0, "block_rows must be a multiple of 8 (sublane tiling)"
    n_pad = _round_up(N, block_rows)
    grid = (n_pad // block_rows,)

    idx_flat = jnp.pad(idx.reshape(N, 1).astype(jnp.int32),
                       ((0, n_pad - N), (0, 0)))
    has_loss = targets is not None
    tgt_src = targets if has_loss else jnp.zeros((B, T), jnp.int32)
    tgt_flat = jnp.pad(tgt_src.reshape(N, 1).astype(jnp.int32),
                       ((0, n_pad - N), (0, 0)))

    # Pad table to (v_pad, v_pad). Padded columns get -1e30 (ignored by logsumexp);
    # padded rows are never selected since token ids < V.
    table_p = jnp.full((v_pad, v_pad), _NEG, dtype=jnp.float32)
    table_p = table_p.at[:V, :V].set(table.astype(jnp.float32))

    kernel = functools.partial(_bigram_kernel, n_valid=N, has_pad=(n_pad != N))

    logits_p, loss_parts = pl.pallas_call(
        kernel,
        grid=grid,
        in_specs=[
            pl.BlockSpec((block_rows, 1), lambda i: (i, 0)),
            pl.BlockSpec((block_rows, 1), lambda i: (i, 0)),
            pl.BlockSpec((v_pad, v_pad), lambda i: (0, 0)),   # resident table block
        ],
        out_specs=(
            pl.BlockSpec((block_rows, v_pad), lambda i: (i, 0)),
            pl.BlockSpec((1, 8, 128), lambda i: (i, 0, 0)),
        ),
        out_shape=(
            jax.ShapeDtypeStruct((n_pad, v_pad), jnp.float32),
            jax.ShapeDtypeStruct((grid[0], 8, 128), jnp.float32),
        ),
        compiler_params=pltpu.CompilerParams(
            dimension_semantics=("parallel",),        # row tiles are independent
            vmem_limit_bytes=32 * 1024 * 1024,
        ),
    )(idx_flat, tgt_flat, table_p)

    logits = logits_p[:N, :V].reshape(B, T, V)
    loss = (jnp.sum(loss_parts[:, 0, 0]) / jnp.float32(N)) if has_loss else None
    return logits, loss


def _reference(idx, targets, table):
    logits = table[idx]                                  # (B, T, V)
    B, T, V = logits.shape
    flat = logits.reshape(B * T, V)
    lse = jax.scipy.special.logsumexp(flat, axis=-1)
    tgt = targets.reshape(B * T)
    loss = jnp.mean(lse - flat[jnp.arange(B * T), tgt])
    return logits, loss


if __name__ == "__main__":
    key = jax.random.PRNGKey(0)
    vocab_size = 65     # e.g. tiny-shakespeare char vocab
    B, T = 2, 8

    k_tab, k_idx, k_tgt = jax.random.split(key, 3)
    table = jax.random.normal(k_tab, (vocab_size, vocab_size), dtype=jnp.float32)
    idx = jax.random.randint(k_idx, (B, T), 0, vocab_size, dtype=jnp.int32)
    targets = jax.random.randint(k_tgt, (B, T), 0, vocab_size, dtype=jnp.int32)

    ref_logits, ref_loss = _reference(idx, targets, table)

    # Exercise: auto tile (single block), multi-tile grid (grid=2), padded-rows path.
    for br in (None, 8, 24):
        logits, loss = bigram_forward(idx, targets, table, block_rows=br)
        jax.block_until_ready((logits, loss))
        assert logits.shape == (B, T, vocab_size)
        assert jnp.allclose(logits, ref_logits, atol=1e-5), f"logits mismatch (block_rows={br})"
        assert jnp.allclose(loss, ref_loss, atol=1e-5), f"loss mismatch (block_rows={br})"

    # targets=None path (logits only, loss is None) — mirrors the PyTorch module.
    logits_nl, loss_nl = bigram_forward(idx, None, table)
    jax.block_until_ready(logits_nl)
    assert loss_nl is None
    assert jnp.allclose(logits_nl, ref_logits, atol=1e-5), "logits mismatch (no targets)"

    # TODO(synk): generate() (autoregressive multinomial sampling loop) is host-side
    # control flow / sampling, not a kernel hot path; not implemented in Pallas.
    print("KERNEL_OK")
</pallas_src>

<mosaic_0001>
module attributes {stable_mosaic.version = 11 : i64} {
  func.func @_bigram_kernel(%arg0: i32, %arg1: memref<16x1xi32, #tpu.memory_space<vmem>>, %arg2: memref<16x1xi32, #tpu.memory_space<vmem>>, %arg3: memref<128x128xf32, #tpu.memory_space<vmem>>, %arg4: memref<16x128xf32, #tpu.memory_space<vmem>>, %arg5: memref<1x8x128xf32, #tpu.memory_space<vmem>>) attributes {dimension_semantics = [#tpu.dimension_semantics<parallel>], iteration_bounds = array<i64: 1>, scalar_prefetch = 0 : i64, scratch_operands = 0 : i64, tpu.core_type = #tpu.core_type<tc>, window_params = [{transform_indices = @transform_0, window_bounds = array<i64: 16, 1>}, {transform_indices = @transform_1, window_bounds = array<i64: 16, 1>}, {pipeline_mode = #tpu.pipeline_mode<synchronous>, transform_indices = @transform_2, window_bounds = array<i64: 128, 128>}, {transform_indices = @transform_3, window_bounds = array<i64: 16, 128>}, {transform_indices = @transform_4, window_bounds = array<i64: 1, 8, 128>}]} {
    %c0 = arith.constant 0 : index
    %c0_0 = arith.constant 0 : index
    %0 = vector.load %arg1[%c0, %c0_0] : memref<16x1xi32, #tpu.memory_space<vmem>>, vector<16x1xi32>
    %1 = tpu.iota {dimensions = array<i32: 1>} : vector<16x128xi32>
    %2 = vector.broadcast %0 : vector<16x1xi32> to vector<16x128xi32>
    %3 = arith.cmpi eq, %1, %2 : vector<16x128xi32>
    %4 = arith.extui %3 : vector<16x128xi1> to vector<16x128xi32>
    %5 = arith.sitofp %4 : vector<16x128xi32> to vector<16x128xf32>
    %c0_1 = arith.constant 0 : index
    %c0_2 = arith.constant 0 : index
    %6 = vector.load %arg3[%c0_1, %c0_2] : memref<128x128xf32, #tpu.memory_space<vmem>>, vector<128x128xf32>
    %cst = arith.constant dense<0.000000e+00> : vector<16x128xf32>
    %7 = tpu.matmul %5, %6, %cst {dimension_numbers = #tpu.dot_dimension_numbers<[1], [0], [0], [1], [0, 0, 1, 1], [], []>} : vector<16x128xf32>, vector<128x128xf32>, vector<16x128xf32> -> vector<16x128xf32>
    %c0_3 = arith.constant 0 : index
    %c0_4 = arith.constant 0 : index
    %8 = vector.load %arg4[%c0_3, %c0_4] : memref<16x128xf32, #tpu.memory_space<vmem>>, vector<16x128xf32>
    tpu.vector_store %arg4[%c0_3, %c0_4], %7 {strides = array<i32>} : memref<16x128xf32, #tpu.memory_space<vmem>>, vector<16x128xf32>,
    %cst_5 = arith.constant dense<0xFF800000> : vector<16xf32>
    %9 = vector.multi_reduction <maximumf>, %7, %cst_5 [1] : vector<16x128xf32> to vector<16xf32>
    %10 = vector.shape_cast %9 : vector<16xf32> to vector<16x1xf32>
    %11 = vector.broadcast %10 : vector<16x1xf32> to vector<16x128xf32>
    %12 = arith.subf %7, %11 : vector<16x128xf32>
    %13 = math.exp %12 : vector<16x128xf32>
    %cst_6 = arith.constant dense<0.000000e+00> : vector<16xf32>
    %14 = vector.multi_reduction <add>, %13, %cst_6 [1] : vector<16x128xf32> to vector<16xf32>
    %15 = vector.shape_cast %14 : vector<16xf32> to vector<16x1xf32>
    %16 = math.log %15 : vector<16x1xf32>
    %17 = arith.addf %10, %16 : vector<16x1xf32>
    %c0_7 = arith.constant 0 : index
    %c0_8 = arith.constant 0 : index
    %18 = vector.load %arg2[%c0_7, %c0_8] : memref<16x1xi32, #tpu.memory_space<vmem>>, vector<16x1xi32>
    %19 = vector.broadcast %18 : vector<16x1xi32> to vector<16x128xi32>
    %20 = arith.cmpi eq, %1, %19 : vector<16x128xi32>
    %cst_9 = arith.constant 0.000000e+00 : f32
    %21 = vector.broadcast %cst_9 : f32 to vector<16x128xf32>
    %22 = arith.select %20, %7, %21 : vector<16x128xi1>, vector<16x128xf32>
    %cst_10 = arith.constant dense<0.000000e+00> : vector<16xf32>
    %23 = vector.multi_reduction <add>, %22, %cst_10 [1] : vector<16x128xf32> to vector<16xf32>
    %24 = vector.shape_cast %23 : vector<16xf32> to vector<16x1xf32>
    %25 = arith.subf %17, %24 : vector<16x1xf32>
    %26 = vector.shape_cast %25 : vector<16x1xf32> to vector<1x16x1xf32>
    %cst_11 = arith.constant dense<0.000000e+00> : vector<1xf32>
    %27 = vector.multi_reduction <add>, %26, %cst_11 [1, 2] : vector<1x16x1xf32> to vector<1xf32>
    %28 = vector.shape_cast %27 : vector<1xf32> to vector<1x1x1xf32>
    %29 = vector.extract %28[0, 0, 0] : f32 from vector<1x1x1xf32>
    %30 = vector.broadcast %29 : f32 to vector<1x8x128xf32>
    %c0_12 = arith.constant 0 : index
    %c0_13 = arith.constant 0 : index
    %c0_14 = arith.constant 0 : index
    %31 = vector.load %arg5[%c0_12, %c0_13, %c0_14] : memref<1x8x128xf32, #tpu.memory_space<vmem>>, vector<1x8x128xf32>
    tpu.vector_store %arg5[%c0_12, %c0_13, %c0_14], %30 {strides = array<i32>} : memref<1x8x128xf32, #tpu.memory_space<vmem>>, vector<1x8x128xf32>,
    return
  }
  func.func @transform_0(%arg0: i32) -> (i32, i32) {
    %c0_i32 = arith.constant 0 : i32
    %c0_i32_0 = arith.constant 0 : i32
    return %arg0, %c0_i32 : i32, i32
  }
  func.func @transform_1(%arg0: i32) -> (i32, i32) {
    %c0_i32 = arith.constant 0 : i32
    %c0_i32_0 = arith.constant 0 : i32
    return %arg0, %c0_i32 : i32, i32
  }
  func.func @transform_2(%arg0: i32) -> (i32, i32) {
    %c0_i32 = arith.constant 0 : i32
    %c0_i32_0 = arith.constant 0 : i32
    %c0_i32_1 = arith.constant 0 : i32
    return %c0_i32, %c0_i32_0 : i32, i32
  }
  func.func @transform_3(%arg0: i32) -> (i32, i32) {
    %c0_i32 = arith.constant 0 : i32
    %c0_i32_0 = arith.constant 0 : i32
    return %arg0, %c0_i32 : i32, i32
  }
  func.func @transform_4(%arg0: i32) -> (i32, i32, i32) {
    %c0_i32 = arith.constant 0 : i32
    %c0_i32_0 = arith.constant 0 : i32
    %c0_i32_1 = arith.constant 0 : i32
    return %arg0, %c0_i32, %c0_i32_0 : i32, i32, i32
  }
}

</mosaic_0001>

<bundles_post_ra>
// kernel: tpu_custom_call.1
= control target key start
LH: loop header
LB: loop body
LE: loop exit
PB: predicated region body
PF: predicated region fallthrough
CT: control target
= control target key end

     0   :  { %10 = vsyncpa [#allocation3], 0  ;;  %s491_s0 = inlined_call_operand.vmem [shape: s32[16,1], index: 0, kind: input, shape index: {}]   ;;  %s492_s1 = inlined_call_operand.vmem [shape: s32[16,1], index: 1, kind: input, shape index: {}]   ;;  %s493_s2 = inlined_call_operand.hbm [shape: f32[128,128], index: 2, kind: input, shape index: {}]   ;;  %s494_s3 = inlined_call_operand.hbm [shape: f32[16,128], index: 3, kind: output, shape index: {0}]   ;;  %s495_s4 = inlined_call_operand.hbm [shape: f32[1,8,128], index: 4, kind: output, shape index: {1}]  }
   0x1   :  { %11 = vsyncpa [#allocation4], 0 }
   0x2   :  { %12 = vsyncpa [#allocation7], 0  ;;  %s405_s15 = smov [#allocation2]   ;;  %s333_s19 = scalar_lea.hbm %s493_s2, 2048 }
   0x3   :  { %s22_s16 = sshll.u32 %s405_s15, 4  ;;  %p334_p0 = scmp.ne.s32.totalorder %s493_s2, %s333_s19  ;;  %s23_s16 = int_to_ptr.vmem [resolvable:$true] %s22_s16 }
   0x4   :  { %p337_p1 = scmp.lt.u32.totalorder %s333_s19, %s493_s2 }
   0x6   :  { %p339_p2 = pnand %p337_p1, %p334_p0 }
   0x8   :  { %342 = shalt.err (!%p339_p2)
}
   0x9   :  { %s343_s24 = scalar_lea.vmem %s23_s16, 2048  ;;  %p348_p4 = scmp.lt.s32.totalorder %s23_s16, %s23_s16 }
   0xa   :  { %p344_p3 = scmp.ne.s32.totalorder %s23_s16, %s343_s24  ;;  %p349_p5 = scmp.lt.s32.totalorder %s343_s24, %s343_s24 }
   0xc   :  { %p350_p6 = por %p349_p5, %p348_p4 }
   0xe   :  { %p351_p7 = pnand %p350_p6, %p344_p3 }
  0x10   :  { %354 = shalt.err (!%p351_p7)
}
  0x11   :  { %s406_s25 = smov 128   ;;  %s407_s26 = smov 8  }
  0x12   :  { %28 = dma.hbm_to_vmem [thread:$0]  %s493_s2, 2048, %s23_s16, [#allocation3], %s406_s25, %s406_s25, %s407_s26  }
  0x13   :  { %399 = dma.done.wait [#allocation3], 2048  }
  0x14   :  { %400 = vsyncadd [#allocation3], 4294965248  ;;  %v408_v0 = vmov 0   ;;  %v32_v1 = vld [vmem:[%s491_s0] sm:$0xff]  ;;  %v49_v3 = vld [vmem:[#allocation2 + $0x8] sm:$0xff]  ;;  %v34_v28 = vlaneseq  ;;  %v409_v31 = vmov 1.0  }
  0x15   :  { %323 = vset.pattern.permute.xlu0 %v408_v0  ;;  %324 = vset.pattern.permute.xlu1 %v408_v0  ;;  %v48_v2 = vld [vmem:[#allocation2] sm:$0xff]  ;;  %v50_v4 = vld [vmem:[#allocation2 + $0x10] sm:$0xff]  ;;  %v33_v5 = vld [vmem:[%s491_s0 + $0x8] sm:$0xff]  ;;  %vm179_vm4 = vcmask 7168  }
  0x16   :  { %37 = vperm.xlu0 %323, %v32_v1   ;;  %v282_v6 = vpack.c.bf16 %v49_v3, %v48_v2  ;;  %v51_v7 = vld [vmem:[#allocation2 + $0x18] sm:$0xff]  ;;  %v52_v9 = vld [vmem:[#allocation2 + $0x20] sm:$0xff]  ;;  %v53_v10 = vld [vmem:[#allocation2 + $0x28] sm:$0xff]  ;;  %v35_v29 = vand.u32 127, %v34_v28 }
  0x17   :  { %v286_v8 = vpack.c.bf16 %v51_v7, %v50_v4  ;;  %v161_v11 = vld [vmem:[%s492_s1] sm:$0xff]  ;;  %v290_v12 = vpack.c.bf16 %v53_v10, %v52_v9  ;;  %v54_v13 = vld [vmem:[#allocation2 + $0x30] sm:$0xff]  ;;  %v55_v14 = vld [vmem:[#allocation2 + $0x38] sm:$0xff] }
  0x18   :  { %283 = vmatprep.subr.bf16.mxu0 %v282_v6  ;;  %v294_v15 = vpack.c.bf16 %v55_v14, %v54_v13  ;;  %v56_v16 = vld [vmem:[#allocation2 + $0x40] sm:$0xff]  ;;  %v57_v17 = vld [vmem:[#allocation2 + $0x48] sm:$0xff]  ;;  %v58_v19 = vld [vmem:[#allocation2 + $0x50] sm:$0xff] }
  0x19   :  { %285 = vmatpush3.bf16.msra.mxu0 %v282_v6  ;;  %v298_v18 = vpack.c.bf16 %v57_v17, %v56_v16  ;;  %v59_v20 = vld [vmem:[#allocation2 + $0x58] sm:$0xff]  ;;  %v60_v22 = vld [vmem:[#allocation2 + $0x60] sm:$0xff]  ;;  %v61_v23 = vld [vmem:[#allocation2 + $0x68] sm:$0xff] }
  0x1a   :  { %40 = vperm.xlu0 %323, %v33_v5   ;;  %287 = vmatprep.subr.bf16.mxu0 %v286_v8  ;;  %v302_v21 = vpack.c.bf16 %v59_v20, %v58_v19  ;;  %v306_v24 = vpack.c.bf16 %v61_v23, %v60_v22  ;;  %v62_v25 = vld [vmem:[#allocation2 + $0x70] sm:$0xff]  ;;  %v63_v26 = vld [vmem:[#allocation2 + $0x78] sm:$0xff]  ;;  %v162_v35 = vld [vmem:[%s492_s1 + $0x8] sm:$0xff]  ;;  %s410_s1 = smov [#allocation5]  }
  0x1b   :  { %v310_v27 = vpack.c.bf16 %v63_v26, %v62_v25  ;;  %s199_s9 = sshll.u32 %s410_s1, 4  ;;  %s200_s9 = int_to_ptr.vmem [resolvable:$true] %s199_s9 }
  0x1c   :  { %s355_s10 = scalar_lea.vmem %s200_s9, 256  ;;  %p360_p9 = scmp.lt.s32.totalorder %s200_s9, %s200_s9 }
  0x1d   :  { %289 = vmatpush3.bf16.msra.mxu0 %v286_v8  ;;  %p356_p8 = scmp.ne.s32.totalorder %s200_s9, %s355_s10  ;;  %p361_p10 = scmp.lt.s32.totalorder %s355_s10, %s355_s10 }
  0x1e   :  { %164 = vperm.xlu0 %323, %v161_v11   ;;  %291 = vmatprep.subr.bf16.mxu0 %v290_v12 }
  0x1f   :  { %p362_p11 = por %p361_p10, %p360_p9 }
  0x21   :  { %293 = vmatpush3.bf16.msra.mxu0 %v290_v12  ;;  %p363_p12 = pnand %p362_p11, %p356_p8 }
  0x22   :  { %295 = vmatprep.subr.bf16.mxu0 %v294_v15 }
  0x25   :  { %297 = vmatpush3.bf16.msra.mxu0 %v294_v15 }
  0x26   :  { %299 = vmatprep.subr.bf16.mxu0 %v298_v18 }
  0x29   :  { %301 = vmatpush3.bf16.msra.mxu0 %v298_v18 }
  0x2a   :  { %303 = vmatprep.subr.bf16.mxu0 %v302_v21 }
  0x2d   :  { %305 = vmatpush3.bf16.msra.mxu0 %v302_v21 }
  0x2e   :  { %307 = vmatprep.subr.bf16.mxu0 %v306_v24 }
  0x31   :  { %309 = vmatpush3.bf16.msra.mxu0 %v306_v24 }
  0x32   :  { %311 = vmatprep.subr.bf16.mxu0 %v310_v27 }
  0x35   :  { %313 = vmatpush3.bf16.msra.mxu0 %v310_v27 }
  0x95   :  { %v38_v30 = vpop.permute.xlu0 %37 }
  0x96   :  { %vm42_vm0 = vcmp.eq.s32.totalorder %v35_v29, %v38_v30 }
  0x97   :  { %279 = vmatprep.mubr.msk.f32.mxu0 %vm42_vm0, %v409_v31 }
  0x99   :  { %v41_v32 = vpop.permute.xlu0 %40 }
  0x9a   :  { %vm43_vm1 = vcmp.eq.s32.totalorder %v35_v29, %v41_v32 }
  0x9b   :  { %280 = vmatmul.mubr.msk.f32.vlgmr.msra.gmra.mrb[0].mxu0 %vm43_vm1, %v409_v31 }
  0x9d   :  { %v165_v44 = vpop.permute.xlu0 %164 }
  0x9e   :  { %vm169_vm2 = vcmp.eq.s32.totalorder %v35_v29, %v165_v44 }
 0x16e   :  { %v281_v33 = vpop.f32.mrb[0].mxu0 }
 0x16f   :  { %140 = vst [vmem:[#allocation5 + $0x8] sm:$0xff] %v281_v33  ;;  %143 = vmax.xlane.f32.xlu1 %v281_v33  ;;  %v130_v34 = vpop.f32.mrb[1].mxu0 }
 0x170   :  { %139 = vst [vmem:[#allocation5] sm:$0xff] %v130_v34  ;;  %v171_v46 = vsel %vm169_vm2, %v130_v34, 0.0 }
 0x173   :  { %141 = vmax.xlane.f32.xlu1 %v130_v34 }
 0x184   :  { %167 = vperm.xlu1 %324, %v162_v35  }
 0x1fc   :  { %v144_v36 = vpop.xlane.xlu1 %143 }
 0x1fd   :  { %v146_v37 = vsub.f32 %v281_v33, %v144_v36 }
 0x1ff   :  { %v149_v38 = vmul.f32 1.442695, %v146_v37 }
 0x200   :  { %v142_v39 = vpop.xlane.xlu1 %141 }
 0x201   :  { %325 = vpow2.f32 %v149_v38  ;;  %v145_v40 = vsub.f32 %v130_v34, %v142_v39 }
 0x203   :  { %v147_v41 = vmul.f32 1.442695, %v145_v40 }
 0x204   :  { %v168_v45 = vpop.permute.xlu1 %167 }
 0x205   :  { %327 = vpow2.f32 %v147_v41  ;;  %vm170_vm3 = vcmp.eq.s32.totalorder %v35_v29, %v168_v45 }
 0x206   :  { %v172_v47 = vsel %vm170_vm3, %v281_v33, 0.0 }
 0x20b   :  { %v326_v42 = vpop.eup %325 }
 0x20c   :  { %153 = vadd.xlane.f32.xlu1 %v326_v42 }
 0x20f   :  { %v328_v43 = vpop.eup %327 }
 0x210   :  { %151 = vadd.xlane.f32.xlu0 %v328_v43 }
 0x214   :  { %173 = vadd.xlane.f32.xlu0 %v171_v46 }
 0x218   :  { %175 = vadd.xlane.f32.xlu0 %v172_v47 }
 0x299   :  { %v154_v48 = vpop.xlane.xlu1 %153 }
 0x29a   :  { %329 = vlog2.f32 %v154_v48 }
 0x29d   :  { %v152_v49 = vpop.xlane.xlu0 %151 }
 0x29e   :  { %331 = vlog2.f32 %v152_v49 }
 0x2a1   :  { %v174_v51 = vpop.xlane.xlu0 %173 }
 0x2a4   :  { %v330_v50 = vpop.eup %329 }
 0x2a5   :  { %v158_v52 = vmul.f32 0.6931472, %v330_v50  ;;  %v176_v56 = vpop.xlane.xlu0 %175 }
 0x2a7   :  { %v160_v53 = vadd.f32 %v158_v52, %v144_v36 }
 0x2a8   :  { %v332_v54 = vpop.eup %331 }
 0x2a9   :  { %v156_v55 = vmul.f32 0.6931472, %v332_v54  ;;  %v178_v58 = vsub.f32 %v160_v53, %v176_v56 }
 0x2ab   :  { %v159_v57 = vadd.f32 %v156_v55, %v142_v39  ;;  %v181_v61 = vsel %vm179_vm4, %v178_v58, 0.0 }
 0x2ad   :  { %v177_v59 = vsub.f32 %v159_v57, %v174_v51 }
 0x2af   :  { %v180_v60 = vsel %vm179_vm4, %v177_v59, 0.0 }
 0x2b0   :  { %v182_v62 = vadd.f32 %v181_v61, %v180_v60 }
 0x2b2   :  { %183 = vadd.xlane.f32.xlu0 %v182_v62 }
 0x2b3   :  { %366 = shalt.err (!%p363_p12)
}
 0x2b4   :  { %s367_s13 = scalar_lea.hbm %s494_s3, 256 }
 0x2b5   :  { %p368_p13 = scmp.ne.s32.totalorder %s494_s3, %s367_s13  ;;  %p371_p0 = scmp.lt.u32.totalorder %s367_s13, %s494_s3 }
 0x2b7   :  { %p373_p1 = pnand %p371_p0, %p368_p13 }
 0x2b9   :  { %376 = shalt.err (!%p373_p1)
}
 0x2ba   :  { %205 = dma.vmem_to_hbm [thread:$0]  %s200_s9, 256, %s494_s3, [#allocation4], %s406_s25, %s406_s25, %s407_s26  }
 0x2bb   :  { %s411_s20 = smov [#allocation6]  }
 0x2bc   :  { %s212_s21 = sshll.u32 %s411_s20, 4  ;;  %s213_s21 = int_to_ptr.vmem [resolvable:$true] %s212_s21 }
 0x2bd   :  { %s377_s23 = scalar_lea.vmem %s213_s21, 128  ;;  %p382_p3 = scmp.lt.s32.totalorder %s213_s21, %s213_s21 }
 0x2be   :  { %p378_p2 = scmp.ne.s32.totalorder %s213_s21, %s377_s23  ;;  %p383_p4 = scmp.lt.s32.totalorder %s377_s23, %s377_s23 }
 0x2c0   :  { %p384_p5 = por %p383_p4, %p382_p3 }
 0x2c2   :  { %p385_p6 = pnand %p384_p5, %p378_p2 }
 0x33f   :  { %v184_v63 = vpop.xlane.xlu0 %183 }
 0x340   :  { %v185_v0 = vrot.slane %v184_v63, 4 }
 0x342   :  { %v186_v1 = vadd.f32 %v185_v0, %v184_v63 }
 0x344   :  { %v187_v2 = vrot.slane %v186_v1, 2 }
 0x346   :  { %v188_v3 = vadd.f32 %v187_v2, %v186_v1 }
 0x348   :  { %v189_v4 = vrot.slane %v188_v3, 1 }
 0x34a   :  { %v190_v5 = vadd.f32 %v189_v4, %v188_v3 }
 0x34c   :  { %314 = vpush %v190_v5 }
 0x37d   :  { %s315_s22 = spop %314 }
 0x37e   :  { %v192_v6 = vstv %s315_s22 }
 0x37f   :  { %193 = vst [vmem:[#allocation6] sm:$0xff] %v192_v6 }
 0x380   :  { %388 = shalt.err (!%p385_p6)
}
 0x381   :  { %s389_s25 = scalar_lea.hbm %s495_s4, 128 }
 0x382   :  { %p390_p7 = scmp.ne.s32.totalorder %s495_s4, %s389_s25  ;;  %p393_p8 = scmp.lt.u32.totalorder %s389_s25, %s495_s4 }
 0x384   :  { %p395_p9 = pnand %p393_p8, %p390_p7 }
 0x386   :  { %398 = shalt.err (!%p395_p9)
}
 0x387   :  { %215 = dma.vmem_to_hbm [thread:$0]  %s213_s21, 128, %s495_s4, [#allocation7]  }
 0x388   :  { %401 = dma.done.wait [#allocation4], 256  }
 0x389   :  { %402 = vsyncadd [#allocation4], 4294967040 }
 0x38a   :  { %403 = dma.done.wait [#allocation7], 128  }
 0x38b   :  { %404 = vsyncadd [#allocation7], 4294967168 }
 0x38c   :  { %222 = vsyncpa [#allocation3], 1 }
 0x38d   :  { %223 = vsyncpa [#allocation4], 1 }
 0x38e   :  { %224 = vsyncpa [#allocation7], 1 }

</bundles_post_ra>
